<compile_context>
chip_gen: v7x
topology: tpu7x:2x2x1
jax: 0.10.0
libtpu: 0.0.40
codegen_flags: <defaults>
</compile_context>

<pallas_src>
import jax
import jax.numpy as jnp
from jax.experimental import pallas as pl
from jax.experimental.pallas import tpu as pltpu


_RW = 256                    # interleaved lanes per row (= 128 (x, y) pairs)
_PAIRS_PER_ROW = _RW // 2    # 128
_MAX_BLOCK_ROWS = 1024       # 1 MiB in + 1 MiB out per step; safe for v5e/v6e/v7x
_TARGET_STEPS = 8            # keep a multi-step "parallel" grid (v7x has 2 TCs)
_MIN_PALLAS_N = 2048         # below this, fused jnp wins (launch overhead)


def _nash_math(x, y):
    x2 = x * x
    y2 = y * y
    a = 0.3 * x2 + y
    b = 0.5 * y2 + x
    return jnp.exp(-0.01 * (x2 + y2)) * (a * a + b * b)


def _nash_kernel(in_ref, out_ref):
    # in_ref: (block_rows, _RW), lanes interleaved [x0, y0, x1, y1, ...].
    c = in_ref[...]
    # Lane l of cy holds c[l + 1] (rotate by -1 == _RW - 1): even lanes see
    # their y partner.  Single XLU op; the kernel is DMA bound so it's free.
    cy = pltpu.roll(c, shift=_RW - 1, axis=1)
    # Valid results land on even lanes; odd lanes hold don't-care values that
    # the wrapper's strided slice discards.
    out_ref[...] = _nash_math(c, cy)


def _round_up(v, m):
    return ((v + m - 1) // m) * m


def _nash_pallas(xy):
    """xy: [N, 2] -> f32[N] via the interleaved-lane Pallas kernel."""
    n = xy.shape[0]
    xy = xy.astype(jnp.float32)

    if n % _PAIRS_PER_ROW == 0:
        rows = n // _PAIRS_PER_ROW
        arr = xy.reshape(rows, _RW)                     # free bitcast, no copy
    else:
        rows = n // _PAIRS_PER_ROW + 1
        flat = xy.reshape(-1)
        flat = jnp.pad(flat, (0, rows * _RW - 2 * n))   # f(0,0)=0, tail dropped
        arr = flat.reshape(rows, _RW)

    block_rows = min(_MAX_BLOCK_ROWS,
                     max(8, _round_up(pl.cdiv(rows, _TARGET_STEPS), 8)))
    steps = pl.cdiv(rows, block_rows)

    elems = rows * _RW
    cost = pl.CostEstimate(flops=12 * elems,
                           transcendentals=elems,
                           bytes_accessed=8 * elems)

    idx = lambda i: (i, 0)
    out = pl.pallas_call(
        _nash_kernel,
        out_shape=jax.ShapeDtypeStruct((rows, _RW), jnp.float32),
        grid=(steps,),
        in_specs=[pl.BlockSpec((block_rows, _RW), idx)],
        out_specs=pl.BlockSpec((block_rows, _RW), idx),
        compiler_params=pltpu.CompilerParams(
            dimension_semantics=("parallel",)),
        cost_estimate=cost,
    )(arr)

    # Row-major flatten is free; keep only the even lanes (valid results).
    return out.reshape(-1)[0:2 * n:2]


@jax.jit
def _forward_xy(xy):
    n = xy.shape[0]
    if n < _MIN_PALLAS_N or n % _PAIRS_PER_ROW != 0:
        # Tiny or 128-unaligned N: fused XLA elementwise already hits the HBM
        # roofline; a pad + kernel would only add traffic (per perf review).
        return _nash_math(xy[:, 0].astype(jnp.float32),
                          xy[:, 1].astype(jnp.float32))
    return _nash_pallas(xy)


def net_forward(xy=None):
    """JAX/Pallas equivalent of Net.forward.

    xy: [N, 2] array or None.  Returns f32[N].
    xy=None uses the module parameters x=0, y=0 (deterministic init) and
    returns shape (1,), matching the PyTorch parameter path.
    """
    if xy is None:
        x0 = jnp.zeros((1,), jnp.float32)
        y0 = jnp.zeros((1,), jnp.float32)
        return _nash_math(x0, y0)
    return _forward_xy(xy)


def _reference(xy):
    x = xy[:, 0].astype(jnp.float32)
    y = xy[:, 1].astype(jnp.float32)
    return jnp.exp(-0.01 * (x ** 2 + y ** 2)) * (
        (0.3 * x ** 2 + y) ** 2 + (0.5 * y ** 2 + x) ** 2)


if __name__ == "__main__":
    key = jax.random.PRNGKey(0)

    # Small but 128-aligned batch -> Pallas path with an 8-step parallel grid.
    N = 65536
    xy = jax.random.normal(key, (N, 2), dtype=jnp.float32)
    out = jax.block_until_ready(net_forward(xy))
    ref = _reference(xy)
    assert out.shape == (N,)
    assert jnp.allclose(out, ref, atol=1e-5, rtol=1e-5)

    # Unaligned tiny batch -> fused-jnp fallback path.
    xy_small = jax.random.normal(jax.random.PRNGKey(0), (10, 2), dtype=jnp.float32)
    out_small = jax.block_until_ready(net_forward(xy_small))
    assert out_small.shape == (10,)
    assert jnp.allclose(out_small, _reference(xy_small), atol=1e-5, rtol=1e-5)

    # Parameter path (xy=None): x = y = 0 -> f(0, 0) = 0.
    out_param = jax.block_until_ready(net_forward(None))
    assert out_param.shape == (1,)
    assert jnp.allclose(out_param, 0.0)

    print("KERNEL_OK")
</pallas_src>

<mosaic_0001>
module attributes {stable_mosaic.version = 11 : i64} {
  func.func @_nash_kernel(%arg0: i32, %arg1: memref<64x256xf32, #tpu.memory_space<vmem>>, %arg2: memref<64x256xf32, #tpu.memory_space<vmem>>) attributes {dimension_semantics = [#tpu.dimension_semantics<parallel>], iteration_bounds = array<i64: 8>, scalar_prefetch = 0 : i64, scratch_operands = 0 : i64, tpu.core_type = #tpu.core_type<tc>, window_params = [{transform_indices = @transform_0, window_bounds = array<i64: 64, 256>}, {transform_indices = @transform_1, window_bounds = array<i64: 64, 256>}]} {
    %c0 = arith.constant 0 : index
    %c0_0 = arith.constant 0 : index
    %0 = vector.load %arg1[%c0, %c0_0] : memref<64x256xf32, #tpu.memory_space<vmem>>, vector<64x256xf32>
    %c255_i32 = arith.constant 255 : i32
    %1 = tpu.dynamic_rotate %0 by %c255_i32 dim 1 : vector<64x256xf32>, i32 -> vector<64x256xf32>
    %2 = arith.mulf %0, %0 : vector<64x256xf32>
    %3 = arith.mulf %1, %1 : vector<64x256xf32>
    %cst = arith.constant 3.000000e-01 : f32
    %4 = vector.broadcast %cst : f32 to vector<64x256xf32>
    %5 = arith.mulf %4, %2 : vector<64x256xf32>
    %6 = arith.addf %5, %1 : vector<64x256xf32>
    %cst_1 = arith.constant 5.000000e-01 : f32
    %7 = vector.broadcast %cst_1 : f32 to vector<64x256xf32>
    %8 = arith.mulf %7, %3 : vector<64x256xf32>
    %9 = arith.addf %8, %0 : vector<64x256xf32>
    %10 = arith.addf %2, %3 : vector<64x256xf32>
    %cst_2 = arith.constant -0.00999999977 : f32
    %11 = vector.broadcast %cst_2 : f32 to vector<64x256xf32>
    %12 = arith.mulf %11, %10 : vector<64x256xf32>
    %13 = math.exp %12 : vector<64x256xf32>
    %14 = arith.mulf %6, %6 : vector<64x256xf32>
    %15 = arith.mulf %9, %9 : vector<64x256xf32>
    %16 = arith.addf %14, %15 : vector<64x256xf32>
    %17 = arith.mulf %13, %16 : vector<64x256xf32>
    %c0_3 = arith.constant 0 : index
    %c0_4 = arith.constant 0 : index
    %18 = vector.load %arg2[%c0_3, %c0_4] : memref<64x256xf32, #tpu.memory_space<vmem>>, vector<64x256xf32>
    tpu.vector_store %arg2[%c0_3, %c0_4], %17 {strides = array<i32>} : memref<64x256xf32, #tpu.memory_space<vmem>>, vector<64x256xf32>,
    return
  }
  func.func @transform_0(%arg0: i32) -> (i32, i32) {
    %c0_i32 = arith.constant 0 : i32
    %c0_i32_0 = arith.constant 0 : i32
    return %arg0, %c0_i32 : i32, i32
  }
  func.func @transform_1(%arg0: i32) -> (i32, i32) {
    %c0_i32 = arith.constant 0 : i32
    %c0_i32_0 = arith.constant 0 : i32
    return %arg0, %c0_i32 : i32, i32
  }
}

</mosaic_0001>

<bundles_post_ra>
// kernel: _forward_xy.1
= control target key start
LH: loop header
LB: loop body
LE: loop exit
PB: predicated region body
PF: predicated region fallthrough
CT: control target
= control target key end

     0   :  { %6 = vsyncpa [#allocation3], 0  ;;  %s1076_s0 = inlined_call_operand.hbm [shape: f32[512,256], index: 0, kind: input, shape index: {}]   ;;  %s1077_s1 = inlined_call_operand.vmem [shape: f32[512,256], index: 1, kind: output, shape index: {}]  }
   0x1   :  { %8 = vsyncpa [#allocation3 + $0x1], 0  ;;  %s690_s6 = smov 0   ;;  %s692_s7 = smov 0  }
   0x2   :  { %s694_s8 = smov 0   ;;  %s696_s9 = smov 0  }
   0x3 LB: > { %s518_s10 = sadd.s32 4294967295, %s674_s9   ;;  %s710_s11 = sadd.s32 1, %s674_s9   ;;  %s674_s9 = sphi %s696_s9, %s1093_s9   ;;  %s670_s8 = sphi %s694_s8, %s1092_s8   ;;  %s666_s7 = sphi %s692_s7, %s1091_s7   ;;  %s662_s6 = sphi %s690_s6, %s1090_s6  }
   0x4   : > { %s18_s12 = ssub.s32 %s674_s9, %s710_s11  ;;  %s21_s13 = sadd.s32 1, %s670_s8 }
   0x5   : > { %p19_p0 = scmp.eq.s32.totalorder %s18_s12, 0  ;;  %p28_p1 = scmp.ne.s32.totalorder %s670_s8, %s666_s7 }
   0x6   : > { %p29_p2 = scmp.eq.s32.totalorder %s674_s9, 0  ;;  %p34_p3 = scmp.ne.s32.totalorder %s666_s7, %s662_s6 }
   0x7   : > { %s720_s14 = scalar_select %p19_p0, %s670_s8, %s21_s13  }
   0x8   : > { %p30_p4 = por %p29_p2, %p28_p1  ;;  %p35_p5 = scmp.eq.s32.totalorder %s518_s10, 0 }
   0x9   : > { %p542_p6 = scmp.lt.s32.totalorder %s674_s9, 8  ;;  %s84_s16 = sand.u32 1, %s670_s8  }
   0xa   : > { %p725_p7 = por %p35_p5, %p34_p3  ;;  %s522_s17 = sshll.u32 %s84_s16, 7 }
   0xb   : > { %s534_s18 = sshll.u32 %s674_s9, 11  ;;  %s88_s22 = scalar_lea.vmem [#allocation2], %s522_s17 }
   0xc   : > { %s734_s21 = scalar_lea.hbm %s1076_s0, %s534_s18  ;;  %s96_s23 = sshll.u32 %s88_s22, 4  ;;  %s736_s23 = int_to_ptr.vmem [resolvable:$true] %s96_s23 }
   0xd   : > { %p738_p8 = pnand %p542_p6, %p30_p4  ;;  %s743_s25 = scalar_lea.sflag [#allocation3], %s84_s16 }
   0xe   : > { %s610_s26 = scalar_lea.hbm %s734_s21, 2048  ;;  %s615_s29 = scalar_lea.hbm %s1076_s0, 16384 }
   0xf   : > { %p611_p10 = scmp.ne.s32.totalorder %s734_s21, %s610_s26  ;;  %p612_p11 = pneg %p738_p8 }
  0x10   : > { %p616_p0 = scmp.lt.u32.totalorder %s734_s21, %s1076_s0  ;;  %p617_p1 = scmp.lt.u32.totalorder %s615_s29, %s610_s26 }
  0x11   : > { %p613_p12 = pnand %p612_p11, %p611_p10  ;;  %p619_p3 = scmp.lt.u32.totalorder %s610_s26, %s734_s21 }
  0x12   : > { %p618_p2 = por %p617_p1, %p616_p0 }
  0x13   : > { %p614_p13 = pneg %p613_p12 }
  0x14   : > { %p620_p4 = por %p619_p3, %p618_p2 }
  0x16   : > { %p621_p5 = pnand %p620_p4, %p614_p13 }
  0x18   : > { %624 = shalt.err (!%p621_p5)
}
  0x19   : > { %s625_s3 = scalar_lea.vmem %s736_s23, 2048  ;;  %s676_s4 = smov [#allocation2]  }
  0x1a   : > { %p626_p6 = scmp.ne.s32.totalorder %s736_s23, %s625_s3  ;;  %s630_s5 = sshll.u32 %s676_s4, 4  ;;  %s631_s5 = int_to_ptr.vmem [resolvable:$false] %s630_s5 }
  0x1b   : > { %s632_s6 = scalar_lea.vmem %s631_s5, 4096  ;;  %p633_p9 = scmp.lt.s32.totalorder %s736_s23, %s631_s5 }
  0x1c   : > { %p628_p10 = pnand %p626_p6, %p612_p11  ;;  %p634_p0 = scmp.lt.s32.totalorder %s632_s6, %s625_s3 }
  0x1e   : > { %p629_p12 = pneg %p628_p10  ;;  %p635_p1 = por %p634_p0, %p633_p9 }
  0x20   : > { %p636_p2 = pnand %p635_p1, %p629_p12 }
  0x22   : > { %639 = shalt.err (!%p636_p2)
}
  0x23   : > { %s677_s12 = smov 256   ;;  %s678_s13 = smov 16  }
  0x24   : > { %541 = dma.hbm_to_vmem [thread:$0]  (!%p738_p8), %s734_s21, 2048, %s736_s23, %s743_s25, %s677_s12, %s677_s12, %s678_s13  }
  0x25   : > { %p104_p11 = scmp.lt.s32.totalorder %s674_s9, 9  ;;  %p1083_p13 = scmp.ge.s32.totalorder %s674_s9, 1 }
  0x27   : > { %p105_p3 = pnand %p1083_p13, %p104_p11 }
  0x29   : > { %108 = sbr.rel (%p105_p3) target bundleno = 249 (0xf9), region = 24 }
  0x30   : > { %s110_s16 = sand.u32 1, %s666_s7  }
  0x31   : > { %s527_s17 = sshll.u32 %s110_s16, 7  ;;  %s111_s18 = scalar_lea.sflag [#allocation3], %s110_s16 }
  0x32   : > { %s775_s19 = scalar_lea.vmem [#allocation2], %s527_s17 }
  0x33   : > { %657 = dma.done.wait (%p725_p7), %s111_s18, 2048  }
  0x34   : > { %659 = vsyncadd (%p725_p7), %s111_s18, 4294965248  ;;  %v782_v0 = vld [vmem:[%s775_s19 + $0x20] sm:$0xff]  ;;  %s679_s20 = smov 127   ;;  %v790_v2 = vld [vmem:[%s775_s19 + $0x30] sm:$0xff]  ;;  %v190_v20 = vlaneseq  ;;  %s918_s15 = sshll.u32 %s518_s10, 3 }
  0x35   : > { %v785_v1 = vld [vmem:[%s775_s19] sm:$0xff]  ;;  %162 = vrot.lane.b32.xlu1 %v782_v0, %s679_s20  ;;  %v793_v3 = vld [vmem:[%s775_s19 + $0x10] sm:$0xff]  ;;  %v814_v8 = vld [vmem:[%s775_s19 + $0x18] sm:$0xff]  ;;  %v861_v26 = vmul.f32 %v782_v0, %v782_v0  ;;  %v870_v29 = vmul.f32 %v790_v2, %v790_v2  ;;  %p136_p7 = scmp.lt.s32.totalorder %s918_s15, 63 }
  0x36   : > { %158 = vrot.lane.b32.xlu0 %v785_v1, %s679_s20  ;;  %v798_v4 = vld [vmem:[%s775_s19 + $0x50] sm:$0xff]  ;;  %v801_v5 = vld [vmem:[%s775_s19 + $0x40] sm:$0xff]  ;;  %v817_v9 = vld [vmem:[%s775_s19 + $0x8] sm:$0xff]  ;;  %v853_v23 = vand.u32 127, %v190_v20  ;;  %v209_v27 = vmul.f32 %v785_v1, %v785_v1  ;;  %v211_v28 = vmul.f32 %v793_v3, %v793_v3  ;;  %v212_v34 = vmul.f32 %v814_v8, %v814_v8 }
  0x37   : > { %v806_v6 = vld [vmem:[%s775_s19 + $0x70] sm:$0xff]  ;;  %v809_v7 = vld [vmem:[%s775_s19 + $0x60] sm:$0xff]  ;;  %v822_v10 = vld [vmem:[%s775_s19 + $0x38] sm:$0xff]  ;;  %v874_v30 = vmul.f32 %v798_v4, %v798_v4  ;;  %v878_v31 = vmul.f32 %v801_v5, %v801_v5  ;;  %v210_v35 = vmul.f32 %v817_v9, %v817_v9  ;;  %v247_v57 = vmul.f32 0.3, %v870_v29  ;;  %s1095_s15 = smov (!%p136_p7, %s918_s15), 63 }
  0x38   : > { %1084 = vst [vmem:[#allocation5_spill] sm:$0xff] %v806_v6  ;;  %1085 = vst [vmem:[#allocation6_spill] sm:$0xff] %v809_v7  ;;  %v825_v11 = vld [vmem:[%s775_s19 + $0x28] sm:$0xff]  ;;  %v830_v12 = vld [vmem:[%s775_s19 + $0x58] sm:$0xff]  ;;  %vm192_vm0 = vcmp.lt.s32.totalorder %v853_v23, 127  ;;  %v882_v32 = vmul.f32 %v806_v6, %v806_v6  ;;  %v886_v33 = vmul.f32 %v809_v7, %v809_v7  ;;  %v894_v36 = vmul.f32 %v822_v10, %v822_v10  ;;  %s535_s9 = sshll.u32 %s1095_s15, 4 }
  0x39   : > { %164 = vrot.lane.b32.xlu1 %v790_v2, %s679_s20  ;;  %v833_v13 = vld [vmem:[%s775_s19 + $0x48] sm:$0xff]  ;;  %v838_v14 = vld [vmem:[%s775_s19 + $0x78] sm:$0xff]  ;;  %v906_v43 = vmul.f32 %v825_v11, %v825_v11  ;;  %v243_v46 = vmul.f32 0.3, %v211_v28  ;;  %v910_v47 = vmul.f32 %v830_v12, %v830_v12  ;;  %v244_v51 = vmul.f32 0.3, %v212_v34  ;;  %s964_s22 = scalar_lea.vmem %s1077_s1, %s535_s9 }
  0x3a   : > { %160 = vrot.lane.b32.xlu0 %v793_v3, %s679_s20  ;;  %1086 = vst [vmem:[#allocation7_spill] sm:$0xff] %v838_v14  ;;  %v841_v15 = vld [vmem:[%s775_s19 + $0x68] sm:$0xff]  ;;  %v914_v48 = vmul.f32 %v833_v13, %v833_v13  ;;  %v241_v54 = vmul.f32 0.3, %v209_v27  ;;  %v922_v55 = vmul.f32 %v838_v14, %v838_v14  ;;  %v242_v56 = vmul.f32 0.3, %v210_v35 }
  0x3b   : > { %v926_v58 = vmul.f32 0.3, %v894_v36  ;;  %v929_v20 = vmul.f32 0.3, %v861_v26 }
  0x3d   : > { %168 = vrot.lane.b32.xlu1 %v798_v4, %s679_s20 }
  0x3e   : > { %166 = vrot.lane.b32.xlu0 %v801_v5, %s679_s20 }
  0x41   : > { %172 = vrot.lane.b32.xlu1 %v806_v6, %s679_s20 }
  0x42   : > { %170 = vrot.lane.b32.xlu0 %v809_v7, %s679_s20 }
  0x45   : > { %176 = vrot.lane.b32.xlu1 %v814_v8, %s679_s20 }
  0x46   : > { %174 = vrot.lane.b32.xlu0 %v817_v9, %s679_s20 }
  0x49   : > { %180 = vrot.lane.b32.xlu1 %v822_v10, %s679_s20 }
  0x4a   : > { %178 = vrot.lane.b32.xlu0 %v825_v11, %s679_s20 }
  0x4d   : > { %184 = vrot.lane.b32.xlu1 %v830_v12, %s679_s20 }
  0x4e   : > { %182 = vrot.lane.b32.xlu0 %v833_v13, %s679_s20 }
  0x51   : > { %188 = vrot.lane.b32.xlu1 %v838_v14, %s679_s20 }
  0x52   : > { %186 = vrot.lane.b32.xlu0 %v841_v15, %s679_s20 }
  0xa7   : > { %v845_v16 = vpop.permute.xlu1 %162 }
  0xa8   : > { %v159_v17 = vpop.permute.xlu0 %158 }
  0xab   : > { %v847_v18 = vpop.permute.xlu1 %164 }
  0xac   : > { %v161_v19 = vpop.permute.xlu0 %160 }
  0xaf   : > { %v849_v21 = vpop.permute.xlu1 %168 }
  0xb0   : > { %v851_v22 = vpop.permute.xlu0 %166 }
  0xb3   : > { %v855_v24 = vpop.permute.xlu1 %172 }
  0xb4   : > { %v857_v25 = vpop.permute.xlu0 %170 }
  0xb7   : > { %v177_v37 = vpop.permute.xlu1 %176 }
  0xb8   : > { %v175_v38 = vpop.permute.xlu0 %174  ;;  %v194_v39 = vsel %vm192_vm0, %v161_v19, %v177_v37  ;;  %v202_v40 = vsel %vm192_vm0, %v177_v37, %v161_v19 }
  0xb9   : > { %v193_v41 = vsel %vm192_vm0, %v159_v17, %v175_v38  ;;  %v201_v42 = vsel %vm192_vm0, %v175_v38, %v159_v17  ;;  %v227_v44 = vmul.f32 %v194_v39, %v194_v39  ;;  %v228_v45 = vmul.f32 %v202_v40, %v202_v40 }
  0xba   : > { %v225_v49 = vmul.f32 %v193_v41, %v193_v41  ;;  %v226_v50 = vmul.f32 %v201_v42, %v201_v42  ;;  %v260_v7 = vadd.f32 %v244_v51, %v202_v40  ;;  %v257_v14 = vadd.f32 %v241_v54, %v193_v41 }
  0xbb   : > { %v307_v52 = vadd.f32 %v227_v44, %v211_v28  ;;  %v308_v53 = vadd.f32 %v228_v45, %v212_v34  ;;  %v275_v59 = vmul.f32 0.5, %v227_v44  ;;  %v276_v60 = vmul.f32 0.5, %v228_v45  ;;  %v181_v45 = vpop.permute.xlu1 %180 }
  0xbc   : > { %v273_v63 = vmul.f32 0.5, %v225_v49  ;;  %v305_v17 = vadd.f32 %v225_v49, %v209_v27  ;;  %v306_v19 = vadd.f32 %v226_v50, %v210_v35  ;;  %v259_v28 = vadd.f32 %v243_v46, %v194_v39  ;;  %v179_v49 = vpop.permute.xlu0 %178 }
  0xbd   : > { %v323_v61 = vmul.f32 -0.01, %v307_v52  ;;  %v324_v62 = vmul.f32 -0.01, %v308_v53  ;;  %v274_v38 = vmul.f32 0.5, %v226_v50  ;;  %v291_v52 = vadd.f32 %v275_v59, %v793_v3 }
  0xbe   : > { %v321_v6 = vmul.f32 -0.01, %v305_v17  ;;  %v322_v44 = vmul.f32 -0.01, %v306_v19  ;;  %v292_v27 = vadd.f32 %v276_v60, %v814_v8  ;;  %v258_v35 = vadd.f32 %v242_v56, %v201_v42 }
  0xbf   : > { %v341_v34 = vmul.f32 1.442695, %v323_v61  ;;  %v343_v37 = vmul.f32 1.442695, %v324_v62  ;;  %v289_v39 = vadd.f32 %v273_v63, %v785_v1  ;;  %v371_v53 = vmul.f32 %v259_v28, %v259_v28 }
  0xc0   : > { %v337_v46 = vmul.f32 1.442695, %v321_v6  ;;  %v339_v50 = vmul.f32 1.442695, %v322_v44  ;;  %v290_v40 = vadd.f32 %v274_v38, %v817_v9  ;;  %v196_v41 = vsel %vm192_vm0, %v847_v18, %v181_v45 }
  0xc1   : > { %578 = vpow2.f32 %v341_v34  ;;  %v204_v3 = vsel %vm192_vm0, %v181_v45, %v847_v18  ;;  %v231_v8 = vmul.f32 %v196_v41, %v196_v41  ;;  %v195_v6 = vsel %vm192_vm0, %v845_v16, %v179_v49 }
  0xc2   : > { %580 = vpow2.f32 %v343_v37  ;;  %v232_v1 = vmul.f32 %v204_v3, %v204_v3  ;;  %v387_v9 = vmul.f32 %v291_v52, %v291_v52  ;;  %v388_v42 = vmul.f32 %v292_v27, %v292_v27 }
  0xc3   : > { %582 = vpow2.f32 %v337_v46  ;;  %v953_v51 = vsel %vm192_vm0, %v179_v49, %v845_v16  ;;  %v372_v18 = vmul.f32 %v260_v7, %v260_v7  ;;  %v385_v54 = vmul.f32 %v289_v39, %v289_v39 }
  0xc4   : > { %584 = vpow2.f32 %v339_v50  ;;  %v311_v56 = vadd.f32 %v231_v8, %v870_v29  ;;  %v312_v59 = vadd.f32 %v232_v1, %v894_v36  ;;  %v386_v60 = vmul.f32 %v290_v40, %v290_v40 }
  0xc5   : > { %v279_v61 = vmul.f32 0.5, %v231_v8  ;;  %v229_v62 = vmul.f32 %v195_v6, %v195_v6  ;;  %v230_v63 = vmul.f32 %v953_v51, %v953_v51  ;;  %v369_v17 = vmul.f32 %v257_v14, %v257_v14 }
  0xc6   : > { %v280_v19 = vmul.f32 0.5, %v232_v1  ;;  %v327_v28 = vmul.f32 -0.01, %v311_v56  ;;  %v328_v34 = vmul.f32 -0.01, %v312_v59  ;;  %v403_v37 = vadd.f32 %v387_v9, %v371_v53  ;;  %v185_v53 = vpop.permute.xlu1 %184  ;;  %v183_v59 = vpop.permute.xlu0 %182 }
  0xc7   : > { %v404_v16 = vadd.f32 %v388_v42, %v372_v18  ;;  %v370_v38 = vmul.f32 %v258_v35, %v258_v35  ;;  %v246_v7 = vmul.f32 0.3, %v906_v43  ;;  %v401_v44 = vadd.f32 %v385_v54, %v369_v17 }
  0xc8   : > { %v263_v29 = vadd.f32 %v247_v57, %v196_v41  ;;  %v349_v45 = vmul.f32 1.442695, %v327_v28  ;;  %v351_v36 = vmul.f32 1.442695, %v328_v34  ;;  %v295_v27 = vadd.f32 %v279_v61, %v790_v2 }
  0xc9   : > { %v402_v14 = vadd.f32 %v386_v60, %v370_v38  ;;  %v309_v49 = vadd.f32 %v229_v62, %v861_v26  ;;  %v310_v35 = vadd.f32 %v230_v63, %v906_v43  ;;  %v296_v57 = vadd.f32 %v280_v19, %v822_v10 }
  0xca   : > { %586 = vpow2.f32 %v349_v45  ;;  %v277_v50 = vmul.f32 0.5, %v229_v62  ;;  %v264_v2 = vadd.f32 %v926_v58, %v204_v3  ;;  %v375_v26 = vmul.f32 %v263_v29, %v263_v29 }
  0xcb   : > { %v579_v52 = vpop.eup %578  ;;  %588 = vpow2.f32 %v351_v36  ;;  %v325_v41 = vmul.f32 -0.01, %v309_v49  ;;  %v326_v8 = vmul.f32 -0.01, %v310_v35  ;;  %v261_v43 = vadd.f32 %v929_v20, %v195_v6 }
  0xcc   : > { %v581_v39 = vpop.eup %580  ;;  %v419_v46 = vmul.f32 %v579_v52, %v403_v37  ;;  %v278_v9 = vmul.f32 0.5, %v230_v63  ;;  %v198_v56 = vsel %vm192_vm0, %v849_v21, %v185_v53  ;;  %v391_v61 = vmul.f32 %v295_v27, %v295_v27 }
  0xcd   : > { %v420_v40 = vmul.f32 %v581_v39, %v404_v16  ;;  %v583_v1 = vpop.eup %582  ;;  %v345_v18 = vmul.f32 1.442695, %v325_v41  ;;  %v347_v54 = vmul.f32 1.442695, %v326_v8  ;;  %v293_v62 = vadd.f32 %v277_v50, %v782_v0  ;;  %v189_v8 = vpop.permute.xlu1 %188 }
  0xce   : > { %435 = vst [vmem:[%s964_s22 + $0x10] sm:$0xff] %v419_v46  ;;  %v585_v42 = vpop.eup %584  ;;  %v417_v10 = vmul.f32 %v583_v1, %v401_v44  ;;  %v206_v58 = vsel %vm192_vm0, %v185_v53, %v849_v21  ;;  %v392_v20 = vmul.f32 %v296_v57, %v296_v57  ;;  %v235_v3 = vmul.f32 %v198_v56, %v198_v56 }
  0xcf   : > { %436 = vst [vmem:[%s964_s22 + $0x18] sm:$0xff] %v420_v40  ;;  %v418_v60 = vmul.f32 %v585_v42, %v402_v14  ;;  %590 = vpow2.f32 %v345_v18  ;;  %v236_v6 = vmul.f32 %v206_v58, %v206_v58  ;;  %v294_v63 = vadd.f32 %v278_v9, %v825_v11 }
  0xd0   : > { %433 = vst [vmem:[%s964_s22] sm:$0xff] %v417_v10  ;;  %592 = vpow2.f32 %v347_v54  ;;  %v987_v17 = vsel %vm192_vm0, %v851_v22, %v183_v59  ;;  %v992_v0 = vsel %vm192_vm0, %v183_v59, %v851_v22  ;;  %v251_v21 = vmul.f32 0.3, %v874_v30 }
  0xd1   : > { %434 = vst [vmem:[%s964_s22 + $0x8] sm:$0xff] %v418_v60  ;;  %v252_v19 = vmul.f32 0.3, %v910_v47  ;;  %v315_v28 = vadd.f32 %v235_v3, %v874_v30  ;;  %v316_v34 = vadd.f32 %v236_v6, %v910_v47  ;;  %v376_v11 = vmul.f32 %v264_v2, %v264_v2 }
  0xd2   : > { %v407_v37 = vadd.f32 %v391_v61, %v375_v26  ;;  %v262_v16 = vadd.f32 %v246_v7, %v953_v51  ;;  %v389_v38 = vmul.f32 %v293_v62, %v293_v62  ;;  %v233_v45 = vmul.f32 %v987_v17, %v987_v17 }
  0xd3   : > { %v331_v44 = vmul.f32 -0.01, %v315_v28  ;;  %v332_v29 = vmul.f32 -0.01, %v316_v34  ;;  %v234_v22 = vmul.f32 %v992_v0, %v992_v0  ;;  %v408_v52 = vadd.f32 %v392_v20, %v376_v11 }
  0xd4   : > { %v587_v36 = vpop.eup %586  ;;  %v373_v14 = vmul.f32 %v261_v43, %v261_v43  ;;  %v390_v30 = vmul.f32 %v294_v63, %v294_v63  ;;  %v283_v27 = vmul.f32 0.5, %v235_v3  ;;  %v284_v35 = vmul.f32 0.5, %v236_v6 }
  0xd5   : > { %v589_v47 = vpop.eup %588  ;;  %v423_v49 = vmul.f32 %v587_v36, %v407_v37  ;;  %v357_v51 = vmul.f32 1.442695, %v331_v44  ;;  %v359_v7 = vmul.f32 1.442695, %v332_v29  ;;  %v1005_v39 = vmul.f32 %v841_v15, %v841_v15 }
  0xd6   : > { %v424_v46 = vmul.f32 %v589_v47, %v408_v52  ;;  %v374_v57 = vmul.f32 %v262_v16, %v262_v16  ;;  %v249_v50 = vmul.f32 0.3, %v878_v31  ;;  %v405_v53 = vadd.f32 %v389_v38, %v373_v14 }
  0xd7   : > { %439 = vst [vmem:[%s964_s22 + $0x30] sm:$0xff] %v423_v49  ;;  %594 = vpow2.f32 %v357_v51  ;;  %v313_v40 = vadd.f32 %v233_v45, %v878_v31  ;;  %v314_v41 = vadd.f32 %v234_v22, %v914_v48  ;;  %v267_v2 = vadd.f32 %v251_v21, %v198_v56  ;;  %v187_v56 = vpop.permute.xlu0 %186 }
  0xd8   : > { %440 = vst [vmem:[%s964_s22 + $0x38] sm:$0xff] %v424_v46  ;;  %v406_v1 = vadd.f32 %v390_v30, %v374_v57  ;;  %v299_v26 = vadd.f32 %v283_v27, %v798_v4  ;;  %596 = vpow2.f32 %v359_v7  ;;  %v268_v9 = vadd.f32 %v252_v19, %v206_v58 }
  0xd9   : > { %v591_v43 = vpop.eup %590  ;;  %v300_v42 = vadd.f32 %v284_v35, %v830_v12  ;;  %v329_v10 = vmul.f32 -0.01, %v313_v40  ;;  %v330_v18 = vmul.f32 -0.01, %v314_v41  ;;  %v281_v31 = vmul.f32 0.5, %v233_v45 }
  0xda   : > { %v593_v54 = vpop.eup %592  ;;  %v421_v59 = vmul.f32 %v591_v43, %v405_v53  ;;  %v200_v60 = vsel %vm192_vm0, %v855_v24, %v189_v8  ;;  %v208_v4 = vsel %vm192_vm0, %v189_v8, %v855_v24  ;;  %v282_v62 = vmul.f32 0.5, %v234_v22  ;;  %v1088_v8 = vld [vmem:[#allocation7_spill] sm:$0xff] }
  0xdb   : > { %v422_v61 = vmul.f32 %v593_v54, %v406_v1  ;;  %v353_v58 = vmul.f32 1.442695, %v329_v10  ;;  %v355_v20 = vmul.f32 1.442695, %v330_v18  ;;  %v395_v12 = vmul.f32 %v299_v26, %v299_v26 }
  0xdc   : > { %437 = vst [vmem:[%s964_s22 + $0x20] sm:$0xff] %v421_v59  ;;  %v250_v3 = vmul.f32 0.3, %v914_v48  ;;  %v239_v6 = vmul.f32 %v200_v60, %v200_v60  ;;  %v240_v63 = vmul.f32 %v208_v4, %v208_v4  ;;  %v379_v21 = vmul.f32 %v267_v2, %v267_v2 }
  0xdd   : > { %438 = vst [vmem:[%s964_s22 + $0x28] sm:$0xff] %v422_v61  ;;  %v396_v19 = vmul.f32 %v300_v42, %v300_v42  ;;  %598 = vpow2.f32 %v353_v58  ;;  %v1026_v28 = vsel %vm192_vm0, %v857_v25, %v187_v56  ;;  %v297_v24 = vadd.f32 %v281_v31, %v801_v5 }
  0xde   : > { %600 = vpow2.f32 %v355_v20  ;;  %v319_v34 = vadd.f32 %v239_v6, %v882_v32  ;;  %v1033_v48 = vsel %vm192_vm0, %v187_v56, %v857_v25  ;;  %v380_v11 = vmul.f32 %v268_v9, %v268_v9 }
  0xdf   : > { %v265_v37 = vadd.f32 %v249_v50, %v987_v17  ;;  %v298_v16 = vadd.f32 %v282_v62, %v833_v13  ;;  %v320_v38 = vadd.f32 %v240_v63, %v922_v55  ;;  %v411_v44 = vadd.f32 %v395_v12, %v379_v21  ;;  %v1087_v50 = vld [vmem:[#allocation5_spill] sm:$0xff]  ;;  %v1089_v12 = vld [vmem:[#allocation6_spill] sm:$0xff] }
  0xe0   : > { %v266_v29 = vadd.f32 %v250_v3, %v992_v0  ;;  %v335_v45 = vmul.f32 -0.01, %v319_v34  ;;  %v237_v5 = vmul.f32 %v1026_v28, %v1026_v28  ;;  %v412_v36 = vadd.f32 %v396_v19, %v380_v11 }
  0xe1   : > { %v595_v22 = vpop.eup %594  ;;  %v287_v23 = vmul.f32 0.5, %v239_v6  ;;  %v336_v25 = vmul.f32 -0.01, %v320_v38  ;;  %v238_v17 = vmul.f32 %v1033_v48, %v1033_v48  ;;  %v393_v14 = vmul.f32 %v297_v24, %v297_v24 }
  0xe2   : > { %v597_v52 = vpop.eup %596  ;;  %v427_v13 = vmul.f32 %v595_v22, %v411_v44  ;;  %v288_v30 = vmul.f32 0.5, %v240_v63  ;;  %v365_v27 = vmul.f32 1.442695, %v335_v45  ;;  %v394_v0 = vmul.f32 %v298_v16, %v298_v16 }
  0xe3   : > { %v428_v47 = vmul.f32 %v597_v52, %v412_v36  ;;  %v255_v49 = vmul.f32 0.3, %v882_v32  ;;  %v367_v35 = vmul.f32 1.442695, %v336_v25  ;;  %v377_v51 = vmul.f32 %v265_v37, %v265_v37 }
  0xe4   : > { %443 = vst [vmem:[%s964_s22 + $0x50] sm:$0xff] %v427_v13  ;;  %v256_v7 = vmul.f32 0.3, %v922_v55  ;;  %602 = vpow2.f32 %v365_v27  ;;  %v317_v46 = vadd.f32 %v237_v5, %v886_v33  ;;  %v378_v57 = vmul.f32 %v266_v29, %v266_v29 }
  0xe5   : > { %444 = vst [vmem:[%s964_s22 + $0x58] sm:$0xff] %v428_v47  ;;  %v303_v53 = vadd.f32 %v287_v23, %v1087_v50  ;;  %604 = vpow2.f32 %v367_v35  ;;  %v318_v40 = vadd.f32 %v238_v17, %v1005_v39  ;;  %v409_v41 = vadd.f32 %v393_v14, %v377_v51 }
  0xe6   : > { %v304_v1 = vadd.f32 %v288_v30, %v1088_v8  ;;  %v333_v32 = vmul.f32 -0.01, %v317_v46  ;;  %v410_v26 = vadd.f32 %v394_v0, %v378_v57  ;;  %v271_v43 = vadd.f32 %v255_v49, %v200_v60 }
  0xe7   : > { %v599_v2 = vpop.eup %598  ;;  %v285_v55 = vmul.f32 0.5, %v237_v5  ;;  %v334_v9 = vmul.f32 -0.01, %v318_v40  ;;  %v272_v18 = vadd.f32 %v256_v7, %v208_v4  ;;  %v286_v54 = vmul.f32 0.5, %v238_v17 }
  0xe8   : > { %v601_v42 = vpop.eup %600  ;;  %v425_v10 = vmul.f32 %v599_v2, %v409_v41  ;;  %v361_v59 = vmul.f32 1.442695, %v333_v32  ;;  %v399_v56 = vmul.f32 %v303_v53, %v303_v53  ;;  %v253_v61 = vmul.f32 0.3, %v886_v33 }
  0xe9   : > { %v426_v31 = vmul.f32 %v601_v42, %v410_v26  ;;  %v363_v62 = vmul.f32 1.442695, %v334_v9  ;;  %v400_v58 = vmul.f32 %v304_v1, %v304_v1  ;;  %v254_v20 = vmul.f32 0.3, %v1005_v39 }
  0xea   : > { %441 = vst [vmem:[%s964_s22 + $0x40] sm:$0xff] %v425_v10  ;;  %606 = vpow2.f32 %v361_v59  ;;  %v383_v60 = vmul.f32 %v271_v43, %v271_v43  ;;  %v301_v3 = vadd.f32 %v285_v55, %v1089_v12  ;;  %v384_v4 = vmul.f32 %v272_v18, %v272_v18 }
  0xeb   : > { %442 = vst [vmem:[%s964_s22 + $0x48] sm:$0xff] %v426_v31  ;;  %608 = vpow2.f32 %v363_v62  ;;  %v302_v6 = vadd.f32 %v286_v54, %v841_v15  ;;  %v269_v21 = vadd.f32 %v253_v61, %v1026_v28  ;;  %v270_v24 = vadd.f32 %v254_v20, %v1033_v48 }
  0xec   : > { %v415_v63 = vadd.f32 %v399_v56, %v383_v60  ;;  %v416_v19 = vadd.f32 %v400_v58, %v384_v4  ;;  %v397_v11 = vmul.f32 %v301_v3, %v301_v3 }
  0xed   : > { %v398_v16 = vmul.f32 %v302_v6, %v302_v6  ;;  %v381_v38 = vmul.f32 %v269_v21, %v269_v21  ;;  %v382_v44 = vmul.f32 %v270_v24, %v270_v24 }
  0xee   : > { %v603_v33 = vpop.eup %602 }
  0xef   : > { %v605_v39 = vpop.eup %604  ;;  %v431_v34 = vmul.f32 %v603_v33, %v415_v63  ;;  %v413_v29 = vadd.f32 %v397_v11, %v381_v38  ;;  %v414_v45 = vadd.f32 %v398_v16, %v382_v44 }
  0xf0   : > { %v432_v37 = vmul.f32 %v605_v39, %v416_v19 }
  0xf1   : > { %447 = vst [vmem:[%s964_s22 + $0x70] sm:$0xff] %v431_v34 }
  0xf2   : > { %448 = vst [vmem:[%s964_s22 + $0x78] sm:$0xff] %v432_v37 }
  0xf4   : > { %v607_v15 = vpop.eup %606 }
  0xf5   : > { %v609_v5 = vpop.eup %608  ;;  %v429_v28 = vmul.f32 %v607_v15, %v413_v29 }
  0xf6   : > { %v430_v22 = vmul.f32 %v609_v5, %v414_v45 }
  0xf7   : > { %445 = vst [vmem:[%s964_s22 + $0x60] sm:$0xff] %v429_v28 }
  0xf8   : > { %446 = vst [vmem:[%s964_s22 + $0x68] sm:$0xff] %v430_v22 }
  0xf9 PF: > { %p11_p8 = scmp.ge.s32.totalorder %s710_s11, 10   ;;  %s1090_s6 = smov %s666_s7 }
  0xfa   : > { %s1091_s7 = smov %s670_s8  ;;  %s1092_s8 = smov %s720_s14 }
  0xfb   : > { %s1093_s9 = smov %s710_s11  ;;  %13 = sbr.rel (!%p11_p8) target bundleno = 3 (0x3), region = 64 }
 0x102   :  { %473 = vsyncpa [#allocation3], 1 }
 0x103   :  { %475 = vsyncpa [#allocation3 + $0x1], 1 }

</bundles_post_ra>
